<compile_context>
chip_gen: v5e
topology: v5e:2x2
jax: 0.10.0
libtpu: 0.0.40
codegen_flags: <defaults>
</compile_context>

<pallas_src>
import math

import jax
import jax.numpy as jnp
import numpy as np
from jax import lax
from jax.experimental import pallas as pl
from jax.experimental.pallas import tpu as pltpu


# --------------------------------------------------------------------------
# make_kernel (same semantics as the PyTorch helper)
# --------------------------------------------------------------------------
def make_kernel(k, upsample_factor=1):
    k = jnp.asarray(k, jnp.float32)
    if k.ndim == 1:
        k = k[None, :] * k[:, None]
    k = k / jnp.sum(k)
    if upsample_factor > 1:
        k = k * (upsample_factor ** 2)
    return k


# --------------------------------------------------------------------------
# Pallas kernel: one grid step == one tile of (B*C) channels, full spatial
# --------------------------------------------------------------------------
def _make_blur_kernel(kh, kw, ho, wo):
    def blur_kernel(ktap_ref, xpad_ref, o_ref):
        # xpad_ref: (TN, Hp, Wp) f32 padded activations
        # ktap_ref: (kh*kw,) f32 flipped FIR taps in SMEM (scalar reads)
        x = xpad_ref[...]                                   # single VMEM load
        acc = jnp.zeros(o_ref.shape, jnp.float32)
        for dy in range(kh):                                # static unroll (K small)
            for dx in range(kw):
                tap = ktap_ref[dy * kw + dx]                # SMEM scalar
                acc = acc + tap * x[:, dy:dy + ho, dx:dx + wo]
        o_ref[...] = acc.astype(o_ref.dtype)
    return blur_kernel


def blur_pallas(x, blur_kernel_2d, pad):
    """upfirdn2d(x, k, up=1, down=1, pad=(pad0, pad1)) == Blur.forward."""
    pad0, pad1 = pad
    B, C, H, W = x.shape
    kh, kw = blur_kernel_2d.shape

    # pad (positive) / crop (negative) exactly like upfirdn2d_native
    xp = jnp.pad(
        x,
        ((0, 0), (0, 0),
         (max(pad0, 0), max(pad1, 0)),
         (max(pad0, 0), max(pad1, 0))))
    hp_full = H + max(pad0, 0) + max(pad1, 0)
    wp_full = W + max(pad0, 0) + max(pad1, 0)
    xp = xp[:, :,
            max(-pad0, 0): hp_full - max(-pad1, 0),
            max(-pad0, 0): wp_full - max(-pad1, 0)]

    Hp = H + pad0 + pad1
    Wp = W + pad0 + pad1
    Ho = Hp - kh + 1
    Wo = Wp - kw + 1
    assert Ho > 0 and Wo > 0, "blur kernel larger than padded input"

    N = B * C
    xflat = xp.reshape(N, Hp, Wp).astype(jnp.float32)

    # true convolution == cross-correlation with the flipped kernel (host fold)
    ktaps = jnp.flip(blur_kernel_2d).reshape(kh * kw).astype(jnp.float32)

    # channel-tile size: largest divisor of N whose input block fits the budget
    bytes_per_slice = Hp * Wp * 4
    budget = 4 * 1024 * 1024                      # per-block VMEM target (v7x-safe)
    tn = max(1, min(N, budget // max(bytes_per_slice, 1)))
    if tn >= N and N > 1 and N % 2 == 0:
        tn = N // 2                               # keep >=2 grid steps for 2-TC split
    while N % tn:
        tn -= 1

    out = pl.pallas_call(
        _make_blur_kernel(kh, kw, Ho, Wo),
        out_shape=jax.ShapeDtypeStruct((N, Ho, Wo), x.dtype),
        grid=(N // tn,),
        in_specs=[
            pl.BlockSpec(memory_space=pltpu.MemorySpace.SMEM),   # FIR taps (kh*kw,)
            pl.BlockSpec((tn, Hp, Wp), lambda n: (n, 0, 0)),     # padded activations
        ],
        out_specs=pl.BlockSpec((tn, Ho, Wo), lambda n: (n, 0, 0)),
        compiler_params=pltpu.CompilerParams(
            dimension_semantics=("parallel",)),
    )(ktaps, xflat)

    return out.reshape(B, C, Ho, Wo).astype(x.dtype)


# --------------------------------------------------------------------------
# Pure-JAX reference (independent path: depthwise conv) for validation
# --------------------------------------------------------------------------
def reference_blur(x, k2d, pad):
    pad0, pad1 = pad
    B, C, H, W = x.shape
    kh, kw = k2d.shape
    xp = jnp.pad(
        x,
        ((0, 0), (0, 0),
         (max(pad0, 0), max(pad1, 0)),
         (max(pad0, 0), max(pad1, 0))))
    hp_full = H + max(pad0, 0) + max(pad1, 0)
    wp_full = W + max(pad0, 0) + max(pad1, 0)
    xp = xp[:, :,
            max(-pad0, 0): hp_full - max(-pad1, 0),
            max(-pad0, 0): wp_full - max(-pad1, 0)]
    w = jnp.flip(k2d)[None, None].astype(jnp.float32)          # (1,1,kh,kw)
    w_dw = jnp.tile(w, (C, 1, 1, 1))                           # depthwise weights
    out = lax.conv_general_dilated(
        xp, w_dw, (1, 1), 'VALID',
        feature_group_count=C,
        dimension_numbers=('NCHW', 'OIHW', 'NCHW'),
        precision=lax.Precision.HIGHEST)
    return out


# --------------------------------------------------------------------------
if __name__ == "__main__":
    B, C, H, W = 2, 4, 16, 16
    pad = (2, 1)                       # typical Blur pad for a 4-tap kernel
    k2d = make_kernel([1, 3, 3, 1])    # -> (4, 4) normalized separable kernel

    key = jax.random.PRNGKey(0)
    x = jax.random.normal(key, (B, C, H, W), jnp.float32)

    fwd = jax.jit(lambda xx: blur_pallas(xx, k2d, pad))
    out = jax.block_until_ready(fwd(x))

    ref = jax.block_until_ready(reference_blur(x, k2d, pad))
    np.testing.assert_allclose(np.asarray(out), np.asarray(ref),
                               rtol=1e-5, atol=1e-5)
    assert out.shape == (B, C, H + pad[0] + pad[1] - 4 + 1,
                         W + pad[0] + pad[1] - 4 + 1)

    print("KERNEL_OK")
</pallas_src>

<mosaic_0001>
module attributes {stable_mosaic.version = 11 : i64} {
  func.func @blur_kernel(%arg0: i32, %arg1: memref<16xf32, #tpu.memory_space<smem>>, %arg2: memref<4x19x19xf32, #tpu.memory_space<vmem>>, %arg3: memref<4x16x16xf32, #tpu.memory_space<vmem>>) attributes {dimension_semantics = [#tpu.dimension_semantics<parallel>], iteration_bounds = array<i64: 2>, scalar_prefetch = 0 : i64, scratch_operands = 0 : i64, tpu.core_type = #tpu.core_type<tc>, window_params = [{transform_indices = @transform_0, window_bounds = array<i64: 16>}, {transform_indices = @transform_1, window_bounds = array<i64: 4, 19, 19>}, {transform_indices = @transform_2, window_bounds = array<i64: 4, 16, 16>}]} {
    %c0 = arith.constant 0 : index
    %c0_0 = arith.constant 0 : index
    %c0_1 = arith.constant 0 : index
    %0 = vector.load %arg2[%c0, %c0_0, %c0_1] : memref<4x19x19xf32, #tpu.memory_space<vmem>>, vector<4x19x19xf32>
    %cst = arith.constant 0.000000e+00 : f32
    %1 = vector.broadcast %cst : f32 to vector<4x16x16xf32>
    %c0_2 = arith.constant 0 : index
    %2 = memref.load %arg1[%c0_2] : memref<16xf32, #tpu.memory_space<smem>>
    %3 = vector.extract_strided_slice %0 {offsets = [0, 0, 0], sizes = [4, 16, 16], strides = [1, 1, 1]} : vector<4x19x19xf32> to vector<4x16x16xf32>
    %4 = vector.broadcast %2 : f32 to vector<4x16x16xf32>
    %5 = arith.mulf %4, %3 : vector<4x16x16xf32>
    %6 = arith.addf %1, %5 : vector<4x16x16xf32>
    %c1 = arith.constant 1 : index
    %7 = memref.load %arg1[%c1] : memref<16xf32, #tpu.memory_space<smem>>
    %8 = vector.extract_strided_slice %0 {offsets = [0, 0, 1], sizes = [4, 16, 16], strides = [1, 1, 1]} : vector<4x19x19xf32> to vector<4x16x16xf32>
    %9 = vector.broadcast %7 : f32 to vector<4x16x16xf32>
    %10 = arith.mulf %9, %8 : vector<4x16x16xf32>
    %11 = arith.addf %6, %10 : vector<4x16x16xf32>
    %c2 = arith.constant 2 : index
    %12 = memref.load %arg1[%c2] : memref<16xf32, #tpu.memory_space<smem>>
    %13 = vector.extract_strided_slice %0 {offsets = [0, 0, 2], sizes = [4, 16, 16], strides = [1, 1, 1]} : vector<4x19x19xf32> to vector<4x16x16xf32>
    %14 = vector.broadcast %12 : f32 to vector<4x16x16xf32>
    %15 = arith.mulf %14, %13 : vector<4x16x16xf32>
    %16 = arith.addf %11, %15 : vector<4x16x16xf32>
    %c3 = arith.constant 3 : index
    %17 = memref.load %arg1[%c3] : memref<16xf32, #tpu.memory_space<smem>>
    %18 = vector.extract_strided_slice %0 {offsets = [0, 0, 3], sizes = [4, 16, 16], strides = [1, 1, 1]} : vector<4x19x19xf32> to vector<4x16x16xf32>
    %19 = vector.broadcast %17 : f32 to vector<4x16x16xf32>
    %20 = arith.mulf %19, %18 : vector<4x16x16xf32>
    %21 = arith.addf %16, %20 : vector<4x16x16xf32>
    %c4 = arith.constant 4 : index
    %22 = memref.load %arg1[%c4] : memref<16xf32, #tpu.memory_space<smem>>
    %23 = vector.extract_strided_slice %0 {offsets = [0, 1, 0], sizes = [4, 16, 16], strides = [1, 1, 1]} : vector<4x19x19xf32> to vector<4x16x16xf32>
    %24 = vector.broadcast %22 : f32 to vector<4x16x16xf32>
    %25 = arith.mulf %24, %23 : vector<4x16x16xf32>
    %26 = arith.addf %21, %25 : vector<4x16x16xf32>
    %c5 = arith.constant 5 : index
    %27 = memref.load %arg1[%c5] : memref<16xf32, #tpu.memory_space<smem>>
    %28 = vector.extract_strided_slice %0 {offsets = [0, 1, 1], sizes = [4, 16, 16], strides = [1, 1, 1]} : vector<4x19x19xf32> to vector<4x16x16xf32>
    %29 = vector.broadcast %27 : f32 to vector<4x16x16xf32>
    %30 = arith.mulf %29, %28 : vector<4x16x16xf32>
    %31 = arith.addf %26, %30 : vector<4x16x16xf32>
    %c6 = arith.constant 6 : index
    %32 = memref.load %arg1[%c6] : memref<16xf32, #tpu.memory_space<smem>>
    %33 = vector.extract_strided_slice %0 {offsets = [0, 1, 2], sizes = [4, 16, 16], strides = [1, 1, 1]} : vector<4x19x19xf32> to vector<4x16x16xf32>
    %34 = vector.broadcast %32 : f32 to vector<4x16x16xf32>
    %35 = arith.mulf %34, %33 : vector<4x16x16xf32>
    %36 = arith.addf %31, %35 : vector<4x16x16xf32>
    %c7 = arith.constant 7 : index
    %37 = memref.load %arg1[%c7] : memref<16xf32, #tpu.memory_space<smem>>
    %38 = vector.extract_strided_slice %0 {offsets = [0, 1, 3], sizes = [4, 16, 16], strides = [1, 1, 1]} : vector<4x19x19xf32> to vector<4x16x16xf32>
    %39 = vector.broadcast %37 : f32 to vector<4x16x16xf32>
    %40 = arith.mulf %39, %38 : vector<4x16x16xf32>
    %41 = arith.addf %36, %40 : vector<4x16x16xf32>
    %c8 = arith.constant 8 : index
    %42 = memref.load %arg1[%c8] : memref<16xf32, #tpu.memory_space<smem>>
    %43 = vector.extract_strided_slice %0 {offsets = [0, 2, 0], sizes = [4, 16, 16], strides = [1, 1, 1]} : vector<4x19x19xf32> to vector<4x16x16xf32>
    %44 = vector.broadcast %42 : f32 to vector<4x16x16xf32>
    %45 = arith.mulf %44, %43 : vector<4x16x16xf32>
    %46 = arith.addf %41, %45 : vector<4x16x16xf32>
    %c9 = arith.constant 9 : index
    %47 = memref.load %arg1[%c9] : memref<16xf32, #tpu.memory_space<smem>>
    %48 = vector.extract_strided_slice %0 {offsets = [0, 2, 1], sizes = [4, 16, 16], strides = [1, 1, 1]} : vector<4x19x19xf32> to vector<4x16x16xf32>
    %49 = vector.broadcast %47 : f32 to vector<4x16x16xf32>
    %50 = arith.mulf %49, %48 : vector<4x16x16xf32>
    %51 = arith.addf %46, %50 : vector<4x16x16xf32>
    %c10 = arith.constant 10 : index
    %52 = memref.load %arg1[%c10] : memref<16xf32, #tpu.memory_space<smem>>
    %53 = vector.extract_strided_slice %0 {offsets = [0, 2, 2], sizes = [4, 16, 16], strides = [1, 1, 1]} : vector<4x19x19xf32> to vector<4x16x16xf32>
    %54 = vector.broadcast %52 : f32 to vector<4x16x16xf32>
    %55 = arith.mulf %54, %53 : vector<4x16x16xf32>
    %56 = arith.addf %51, %55 : vector<4x16x16xf32>
    %c11 = arith.constant 11 : index
    %57 = memref.load %arg1[%c11] : memref<16xf32, #tpu.memory_space<smem>>
    %58 = vector.extract_strided_slice %0 {offsets = [0, 2, 3], sizes = [4, 16, 16], strides = [1, 1, 1]} : vector<4x19x19xf32> to vector<4x16x16xf32>
    %59 = vector.broadcast %57 : f32 to vector<4x16x16xf32>
    %60 = arith.mulf %59, %58 : vector<4x16x16xf32>
    %61 = arith.addf %56, %60 : vector<4x16x16xf32>
    %c12 = arith.constant 12 : index
    %62 = memref.load %arg1[%c12] : memref<16xf32, #tpu.memory_space<smem>>
    %63 = vector.extract_strided_slice %0 {offsets = [0, 3, 0], sizes = [4, 16, 16], strides = [1, 1, 1]} : vector<4x19x19xf32> to vector<4x16x16xf32>
    %64 = vector.broadcast %62 : f32 to vector<4x16x16xf32>
    %65 = arith.mulf %64, %63 : vector<4x16x16xf32>
    %66 = arith.addf %61, %65 : vector<4x16x16xf32>
    %c13 = arith.constant 13 : index
    %67 = memref.load %arg1[%c13] : memref<16xf32, #tpu.memory_space<smem>>
    %68 = vector.extract_strided_slice %0 {offsets = [0, 3, 1], sizes = [4, 16, 16], strides = [1, 1, 1]} : vector<4x19x19xf32> to vector<4x16x16xf32>
    %69 = vector.broadcast %67 : f32 to vector<4x16x16xf32>
    %70 = arith.mulf %69, %68 : vector<4x16x16xf32>
    %71 = arith.addf %66, %70 : vector<4x16x16xf32>
    %c14 = arith.constant 14 : index
    %72 = memref.load %arg1[%c14] : memref<16xf32, #tpu.memory_space<smem>>
    %73 = vector.extract_strided_slice %0 {offsets = [0, 3, 2], sizes = [4, 16, 16], strides = [1, 1, 1]} : vector<4x19x19xf32> to vector<4x16x16xf32>
    %74 = vector.broadcast %72 : f32 to vector<4x16x16xf32>
    %75 = arith.mulf %74, %73 : vector<4x16x16xf32>
    %76 = arith.addf %71, %75 : vector<4x16x16xf32>
    %c15 = arith.constant 15 : index
    %77 = memref.load %arg1[%c15] : memref<16xf32, #tpu.memory_space<smem>>
    %78 = vector.extract_strided_slice %0 {offsets = [0, 3, 3], sizes = [4, 16, 16], strides = [1, 1, 1]} : vector<4x19x19xf32> to vector<4x16x16xf32>
    %79 = vector.broadcast %77 : f32 to vector<4x16x16xf32>
    %80 = arith.mulf %79, %78 : vector<4x16x16xf32>
    %81 = arith.addf %76, %80 : vector<4x16x16xf32>
    %c0_3 = arith.constant 0 : index
    %c0_4 = arith.constant 0 : index
    %c0_5 = arith.constant 0 : index
    %82 = vector.load %arg3[%c0_3, %c0_4, %c0_5] : memref<4x16x16xf32, #tpu.memory_space<vmem>>, vector<4x16x16xf32>
    tpu.vector_store %arg3[%c0_3, %c0_4, %c0_5], %81 {strides = array<i32>} : memref<4x16x16xf32, #tpu.memory_space<vmem>>, vector<4x16x16xf32>,
    return
  }
  func.func @transform_0(%arg0: i32) -> i32 {
    %c0_i32 = arith.constant 0 : i32
    %c0_i32_0 = arith.constant 0 : i32
    return %c0_i32 : i32
  }
  func.func @transform_1(%arg0: i32) -> (i32, i32, i32) {
    %c0_i32 = arith.constant 0 : i32
    %c0_i32_0 = arith.constant 0 : i32
    %c0_i32_1 = arith.constant 0 : i32
    return %arg0, %c0_i32, %c0_i32_0 : i32, i32, i32
  }
  func.func @transform_2(%arg0: i32) -> (i32, i32, i32) {
    %c0_i32 = arith.constant 0 : i32
    %c0_i32_0 = arith.constant 0 : i32
    %c0_i32_1 = arith.constant 0 : i32
    return %arg0, %c0_i32, %c0_i32_0 : i32, i32, i32
  }
}

</mosaic_0001>

<bundles_post_ra>
// kernel: _lambda_.1
= control target key start
LH: loop header
LB: loop body
LE: loop exit
PB: predicated region body
PF: predicated region fallthrough
CT: control target
= control target key end

     0   :  { %7 = vsyncpa [#allocation4], 0  ;;  %s2389_s0 = inlined_call_operand.vmem [shape: f32[16], index: 0, kind: input, shape index: {}]   ;;  %s2390_s1 = inlined_call_operand.vmem [shape: f32[8,19,19], index: 1, kind: input, shape index: {}]   ;;  %s2391_s2 = inlined_call_operand.hbm [shape: f32[8,16,16], index: 2, kind: output, shape index: {}]  }
   0x1   :  { %8 = vsyncpa [#allocation3], 0 }
   0x2   :  { %10 = vsyncpa [#allocation3 + $0x1], 0  ;;  %s1537_s9 = smov 0   ;;  %s1539_s10 = smov 0  }
   0x3   :  { %s1541_s11 = smov 0   ;;  %s1543_s12 = smov 0  }
   0x4 LB: > { %s1558_s13 = sadd.s32 4294967295, %s1514_s12   ;;  %s1333_s14 = sadd.s32 4294967294, %s1514_s12   ;;  %s1514_s12 = sphi %s1543_s12, %s2397_s12   ;;  %s1510_s11 = sphi %s1541_s11, %s2396_s11   ;;  %s1506_s10 = sphi %s1539_s10, %s2395_s10   ;;  %s1502_s9 = sphi %s1537_s9, %s2394_s9  }
   0x5   : > { %s1562_s15 = sadd.s32 1, %s1514_s12   ;;  %s70_s16 = sadd.s32 1, %s1510_s11 }
   0x6   : > { %s67_s17 = ssub.s32 %s1514_s12, %s1562_s15  ;;  %p80_p0 = scmp.ne.s32.totalorder %s1510_s11, %s1506_s10 }
   0x7   : > { %p68_p1 = scmp.eq.s32.totalorder %s67_s17, 0  ;;  %p81_p2 = scmp.eq.s32.totalorder %s1558_s13, 1 }
   0x8   : > { %p86_p3 = scmp.ne.s32.totalorder %s1506_s10, %s1502_s9  ;;  %p87_p4 = scmp.eq.s32.totalorder %s1333_s14, 1 }
   0x9   : > { %s1573_s18 = scalar_select %p68_p1, %s1510_s11, %s70_s16  }
   0xa   : > { %p1575_p5 = por %p81_p2, %p80_p0  ;;  %p1579_p6 = por %p87_p4, %p86_p3 }
   0xb   : > { %p1334_p7 = scmp.ge.s32.totalorder %s1514_s12, 1  ;;  %p94_p8 = scmp.lt.s32.totalorder %s1514_s12, 3 }
   0xc   : > { %p1380_p9 = scmp.eq.s32.totalorder %s1558_s13, 0  ;;  %s106_s23 = sshll.u32 %s2389_s0, 4  ;;  %s107_s23 = int_to_ptr.vmem [resolvable:$true] %s106_s23 }
   0xd   : > { %p95_p10 = pnand %p1334_p7, %p94_p8  ;;  %s1516_s24 = smov [#allocation2]  }
   0xf   : > { %p1372_p11 = pneg %p95_p10  ;;  %129 = sbr.rel (%p95_p10) target bundleno = 403 (0x193), region = 28 }
  0x11   : > { %p1373_p12 = pnand %p1380_p9, %p1372_p11 }
  0x13   : > { %1375 = dma.vmem_to_smem (!%p1373_p12), %s107_s23, 16, %s1516_s24, [#allocation4]  }
  0x14   : > { %1493 = dma.done.wait (%p1380_p9), [#allocation4], 16  }
  0x15   : > { %1495 = vsyncadd (%p1380_p9), [#allocation4], 4294967280 }
  0x16   : > { %136 = sfence }
  0x17   : > { %s1340_s25 = sshll.u32 %s1558_s13, 2  ;;  %s1342_s26 = sld [smem:[#allocation2 + $0x1]]  ;;  %vm368_vm0 = vcmask 1046528   ;;  %vm665_vm1 = vcmask 1045504   ;;  %vm962_vm2 = vcmask 1044480   ;;  %vm1233_vm3 = vcmask 130048  }
  0x18   : > { %p155_p13 = scmp.lt.s32.totalorder %s1340_s25, 7  ;;  %s1517_s3 = smov 127  }
  0x19   : > { %s1343_s4 = sld [smem:[#allocation2 + $0x2]]  ;;  %s1518_s5 = smov 126  }
  0x1a   : > { %s2399_s25 = smov (!%p155_p13, %s1340_s25), 7  ;;  %s1344_s6 = sld [smem:[#allocation2 + $0x3]] }
  0x1b   : > { %s1365_s27 = smul.u32 24, %s2399_s25  ;;  %s1519_s7 = smov 125  }
  0x1c   : > { %s1346_s8 = sld [smem:[#allocation2 + $0x5]] }
  0x1d   : > { %v193_v0 = vstv %s1342_s26  ;;  %s1593_s30 = scalar_lea.vmem %s2390_s1, %s1365_s27  ;;  %s1347_s14 = sld [smem:[#allocation2 + $0x6]] }
  0x1e   : > { %v1596_v1 = vld [vmem:[%s1593_s30 + $0x18] sm:$0xff]  ;;  %v1599_v2 = vld [vmem:[%s1593_s30] sm:$0xff]  ;;  %v1604_v5 = vld [vmem:[%s1593_s30 + $0x30] sm:$0xff]  ;;  %s1348_s16 = sld [smem:[#allocation2 + $0x7]] }
  0x1f   : > { %v196_v3 = vmul.f32 %v193_v0, %v1596_v1  ;;  %v194_v4 = vmul.f32 %v193_v0, %v1599_v2  ;;  %v198_v6 = vmul.f32 %v193_v0, %v1604_v5  ;;  %v1610_v7 = vld [vmem:[%s1593_s30 + $0x20] sm:$0xff]  ;;  %v1613_v8 = vld [vmem:[%s1593_s30 + $0x8] sm:$0xff]  ;;  %v1617_v9 = vld [vmem:[%s1593_s30 + $0x38] sm:$0xff]  ;;  %v243_v17 = vstv %s1343_s4  ;;  %s174_s17 = sld [smem:[#allocation2]] }
  0x20   : > { %v197_v10 = vmul.f32 %v193_v0, %v1610_v7  ;;  %v195_v11 = vmul.f32 %v193_v0, %v1613_v8  ;;  %v199_v12 = vmul.f32 %v193_v0, %v1617_v9  ;;  %v1625_v13 = vld [vmem:[%s1593_s30 + $0x50] sm:$0xff]  ;;  %v1628_v14 = vld [vmem:[%s1593_s30 + $0x48] sm:$0xff]  ;;  %v244_v18 = vmul.f32 %v243_v17, %v1599_v2  ;;  %v1679_v47 = vld [vmem:[%s1593_s30 + $0x40] sm:$0x7]  ;;  %s1350_s21 = sld [smem:[#allocation2 + $0x9]] }
  0x21   : > { %214 = vrot.lane.b32.xlu1 %v196_v3, %s1517_s3  ;;  %210 = vrot.lane.b32.xlu0 %v194_v4, %s1517_s3  ;;  %v201_v15 = vmul.f32 %v193_v0, %v1625_v13  ;;  %v200_v16 = vmul.f32 %v193_v0, %v1628_v14  ;;  %v246_v19 = vmul.f32 %v243_v17, %v1596_v1  ;;  %v293_v25 = vstv %s1344_s6  ;;  %v1662_v32 = vld [vmem:[%s1593_s30 + $0x10] sm:$0x7]  ;;  %s1351_s22 = sld [smem:[#allocation2 + $0xa]] }
  0x22   : > { %218 = vrot.lane.b32.xlu2 %v198_v6, %s1517_s3  ;;  %v245_v20 = vmul.f32 %v243_v17, %v1613_v8  ;;  %v247_v21 = vmul.f32 %v243_v17, %v1610_v7  ;;  %v249_v22 = vmul.f32 %v243_v17, %v1617_v9  ;;  %v248_v23 = vmul.f32 %v243_v17, %v1604_v5  ;;  %v1676_v45 = vld [vmem:[%s1593_s30 + $0x28] sm:$0x7]  ;;  %v1692_v59 = vld [vmem:[%s1593_s30 + $0x58] sm:$0x7]  ;;  %s1345_s23 = sld [smem:[#allocation2 + $0x4]] }
  0x23   : > { %v250_v24 = vmul.f32 %v243_v17, %v1628_v14  ;;  %v294_v26 = vmul.f32 %v293_v25, %v1599_v2  ;;  %v251_v27 = vmul.f32 %v243_v17, %v1625_v13  ;;  %v295_v28 = vmul.f32 %v293_v25, %v1613_v8  ;;  %s1352_s24 = sld [smem:[#allocation2 + $0xb]] }
  0x24   : > { %v297_v29 = vmul.f32 %v293_v25, %v1610_v7  ;;  %v296_v30 = vmul.f32 %v293_v25, %v1596_v1  ;;  %v298_v31 = vmul.f32 %v293_v25, %v1604_v5  ;;  %v406_v33 = vstv %s1346_s8  ;;  %s1935_s25 = sld [smem:[#allocation2 + $0xd]] }
  0x25   : > { %v300_v34 = vmul.f32 %v293_v25, %v1628_v14  ;;  %v299_v35 = vmul.f32 %v293_v25, %v1617_v9  ;;  %v408_v36 = vmul.f32 %v406_v33, %v1613_v8  ;;  %v409_v37 = vmul.f32 %v406_v33, %v1662_v32  ;;  %s1355_s26 = sld [smem:[#allocation2 + $0xe]] }
  0x26   : > { %v407_v38 = vmul.f32 %v406_v33, %v1599_v2  ;;  %v301_v39 = vmul.f32 %v293_v25, %v1625_v13  ;;  %v410_v40 = vmul.f32 %v406_v33, %v1596_v1  ;;  %v411_v43 = vmul.f32 %v406_v33, %v1610_v7  ;;  %s1349_s27 = sld [smem:[#allocation2 + $0x8]] }
  0x27   : > { %v432_v41 = vrot.slane %v408_v36, 1  ;;  %v434_v42 = vrot.slane %v409_v37, 1  ;;  %v413_v51 = vmul.f32 %v406_v33, %v1604_v5  ;;  %v414_v52 = vmul.f32 %v406_v33, %v1617_v9  ;;  %s1356_s28 = sld [smem:[#allocation2 + $0xf]] }
  0x28   : > { %v431_v44 = vrot.slane %v407_v38, 1  ;;  %v436_v46 = vrot.slane %v410_v40, 1  ;;  %v437_v49 = vrot.slane %v411_v43, 1  ;;  %v412_v53 = vmul.f32 %v406_v33, %v1676_v45  ;;  %s1353_s29 = sld [smem:[#allocation2 + $0xc]] }
  0x29   : > { %216 = vrot.lane.b32.xlu1 %v197_v10, %s1517_s3  ;;  %212 = vrot.lane.b32.xlu0 %v195_v11, %s1517_s3  ;;  %v435_v48 = vsel %vm368_vm0, %v432_v41, %v434_v42  ;;  %v415_v55 = vmul.f32 %v406_v33, %v1679_v47  ;;  %v441_v56 = vrot.slane %v413_v51, 1  ;;  %v442_v57 = vrot.slane %v414_v52, 1 }
  0x2a   : > { %220 = vrot.lane.b32.xlu2 %v199_v12, %s1517_s3  ;;  %v433_v50 = vsel %vm368_vm0, %v431_v44, %v432_v41  ;;  %v438_v54 = vsel %vm368_vm0, %v436_v46, %v437_v49  ;;  %v439_v58 = vrot.slane %v412_v53, 1  ;;  %v417_v61 = vmul.f32 %v406_v33, %v1625_v13 }
  0x2b   : > { %v444_v60 = vrot.slane %v415_v55, 1  ;;  %v418_v62 = vmul.f32 %v406_v33, %v1692_v59  ;;  %v443_v63 = vsel %vm368_vm0, %v441_v56, %v442_v57  ;;  %v416_v3 = vmul.f32 %v406_v33, %v1628_v14 }
  0x2c   : > { %v440_v0 = vsel %vm368_vm0, %v437_v49, %v439_v58  ;;  %v484_v4 = vstv %s1347_s14  ;;  %v447_v11 = vrot.slane %v417_v61, 1  ;;  %v562_v42 = vstv %s1348_s16 }
  0x2d   : > { %v445_v6 = vsel %vm368_vm0, %v442_v57, %v444_v60  ;;  %v485_v10 = vmul.f32 %v484_v4, %v1599_v2  ;;  %v449_v12 = vrot.slane %v418_v62, 1  ;;  %v490_v25 = vmul.f32 %v484_v4, %v1676_v45 }
  0x2e   : > { %v494_v37 = vmul.f32 %v484_v4, %v1628_v14  ;;  %v495_v40 = vmul.f32 %v484_v4, %v1625_v13  ;;  %v564_v51 = vmul.f32 %v562_v42, %v1613_v8  ;;  %v496_v52 = vmul.f32 %v484_v4, %v1692_v59 }
  0x2f   : > { %v509_v17 = vrot.slane %v485_v10, 1  ;;  %v567_v61 = vmul.f32 %v562_v42, %v1610_v7  ;;  %v568_v62 = vmul.f32 %v562_v42, %v1676_v45 }
  0x30   : > { %v524_v43 = vrot.slane %v494_v37, 1  ;;  %v588_v56 = vrot.slane %v564_v51, 1  ;;  %v527_v57 = vrot.slane %v496_v52, 1 }
  0x31   : > { %224 = vrot.lane.b32.xlu1 %v201_v15, %s1517_s3  ;;  %222 = vrot.lane.b32.xlu0 %v200_v16, %s1517_s3  ;;  %v486_v15 = vmul.f32 %v484_v4, %v1613_v8  ;;  %v446_v16 = vrot.slane %v416_v3, 1  ;;  %v566_v3 = vmul.f32 %v562_v42, %v1596_v1  ;;  %v593_v10 = vrot.slane %v567_v61, 1 }
  0x32   : > { %260 = vrot.lane.b32.xlu2 %v244_v18, %s1518_s5  ;;  %v450_v18 = vsel %vm368_vm0, %v447_v11, %v449_v12  ;;  %v570_v12 = vmul.f32 %v562_v42, %v1617_v9 }
  0x39   : > { %264 = vrot.lane.b32.xlu1 %v246_v19, %s1518_s5  ;;  %262 = vrot.lane.b32.xlu0 %v245_v20, %s1518_s5  ;;  %v510_v19 = vrot.slane %v486_v15, 1  ;;  %v448_v20 = vsel %vm368_vm0, %v446_v16, %v447_v11  ;;  %v595_v11 = vrot.slane %v568_v62, 1  ;;  %v592_v15 = vrot.slane %v566_v3, 1 }
  0x3a   : > { %266 = vrot.lane.b32.xlu2 %v247_v21, %s1518_s5  ;;  %v488_v21 = vmul.f32 %v484_v4, %v1596_v1 }
  0x41   : > { %270 = vrot.lane.b32.xlu1 %v249_v22, %s1518_s5  ;;  %268 = vrot.lane.b32.xlu0 %v248_v23, %s1518_s5  ;;  %v489_v22 = vmul.f32 %v484_v4, %v1610_v7  ;;  %v487_v23 = vmul.f32 %v484_v4, %v1662_v32 }
  0x42   : > { %272 = vrot.lane.b32.xlu2 %v250_v24, %s1518_s5  ;;  %v511_v24 = vsel %vm368_vm0, %v509_v17, %v510_v19 }
  0x49   : > { %310 = vrot.lane.b32.xlu1 %v294_v26, %s1519_s7  ;;  %274 = vrot.lane.b32.xlu0 %v251_v27, %s1518_s5  ;;  %v514_v26 = vrot.slane %v488_v21, 1  ;;  %v515_v27 = vrot.slane %v489_v22, 1  ;;  %v594_v21 = vsel %vm368_vm0, %v592_v15, %v593_v10  ;;  %v572_v22 = vmul.f32 %v562_v42, %v1628_v14 }
  0x4a   : > { %312 = vrot.lane.b32.xlu2 %v295_v28, %s1519_s7  ;;  %v512_v28 = vrot.slane %v487_v23, 1  ;;  %v573_v23 = vmul.f32 %v562_v42, %v1625_v13 }
  0x4b   : > { %v516_v33 = vsel %vm368_vm0, %v514_v26, %v515_v27  ;;  %v574_v26 = vmul.f32 %v562_v42, %v1692_v59 }
  0x51   : > { %316 = vrot.lane.b32.xlu1 %v297_v29, %s1519_s7  ;;  %314 = vrot.lane.b32.xlu0 %v296_v30, %s1519_s7  ;;  %v517_v29 = vrot.slane %v490_v25, 1  ;;  %v492_v30 = vmul.f32 %v484_v4, %v1617_v9 }
  0x52   : > { %318 = vrot.lane.b32.xlu2 %v298_v31, %s1519_s7  ;;  %v493_v31 = vmul.f32 %v484_v4, %v1679_v47 }
  0x53   : > { %v518_v36 = vsel %vm368_vm0, %v515_v27, %v517_v29  ;;  %v520_v38 = vrot.slane %v492_v30, 1  ;;  %v603_v29 = vrot.slane %v573_v23, 1 }
  0x59   : > { %322 = vrot.lane.b32.xlu1 %v300_v34, %s1519_s7  ;;  %320 = vrot.lane.b32.xlu0 %v299_v35, %s1519_s7  ;;  %v513_v34 = vsel %vm368_vm0, %v510_v19, %v512_v28  ;;  %v491_v35 = vmul.f32 %v484_v4, %v1604_v5  ;;  %v596_v19 = vsel %vm368_vm0, %v593_v10, %v595_v11  ;;  %v602_v28 = vrot.slane %v572_v22, 1 }
  0x5a   : > { %324 = vrot.lane.b32.xlu2 %v301_v39, %s1519_s7  ;;  %v522_v39 = vrot.slane %v493_v31, 1  ;;  %v703_v31 = vstv %s1350_s21 }
  0x5b   : > { %v519_v41 = vrot.slane %v491_v35, 1  ;;  %v605_v35 = vrot.slane %v574_v26, 1  ;;  %v710_v3 = vmul.f32 %v703_v31, %v1604_v5  ;;  %v712_v11 = vmul.f32 %v703_v31, %v1679_v47 }
  0x5c   : > { %v523_v46 = vsel %vm368_vm0, %v520_v38, %v522_v39  ;;  %v706_v39 = vmul.f32 %v703_v31, %v1662_v32  ;;  %v714_v26 = vmul.f32 %v703_v31, %v1625_v13 }
  0x5d   : > { %v521_v49 = vsel %vm368_vm0, %v519_v41, %v520_v38  ;;  %v705_v38 = vmul.f32 %v703_v31, %v1613_v8  ;;  %v738_v15 = vrot.slane %v710_v3, 2 }
  0x5e   : > { %v731_v51 = vrot.slane %v706_v39, 2 }
  0x61   : > { %453 = vrot.lane.b32.xlu1 %v435_v48, %s1517_s3  ;;  %451 = vrot.lane.b32.xlu0 %v433_v50, %s1517_s3  ;;  %v525_v48 = vrot.slane %v495_v40, 1  ;;  %v563_v50 = vmul.f32 %v562_v42, %v1599_v2  ;;  %v704_v40 = vmul.f32 %v703_v31, %v1599_v2 }
  0x62   : > { %455 = vrot.lane.b32.xlu2 %v438_v54, %s1517_s3  ;;  %v565_v54 = vmul.f32 %v562_v42, %v1662_v32 }
  0x63   : > { %v526_v53 = vsel %vm368_vm0, %v524_v43, %v525_v48  ;;  %v587_v55 = vrot.slane %v563_v50, 1  ;;  %v729_v50 = vrot.slane %v705_v38, 2  ;;  %v728_v52 = vrot.slane %v704_v40, 2 }
  0x64   : > { %v590_v58 = vrot.slane %v565_v54, 1  ;;  %v744_v38 = vrot.slane %v714_v26, 2 }
  0x65   : > { %v732_v61 = vsel %vm665_vm1, %v729_v50, %v731_v51  ;;  %v730_v62 = vsel %vm665_vm1, %v728_v52, %v729_v50 }
  0x66   : > { %v591_v4 = vsel %vm368_vm0, %v588_v56, %v590_v58 }
  0x69   : > { %459 = vrot.lane.b32.xlu1 %v443_v63, %s1517_s3  ;;  %457 = vrot.lane.b32.xlu0 %v440_v0, %s1517_s3  ;;  %v589_v63 = vsel %vm368_vm0, %v587_v55, %v588_v56  ;;  %v528_v0 = vsel %vm368_vm0, %v525_v48, %v527_v57  ;;  %v707_v48 = vmul.f32 %v703_v31, %v1596_v1 }
  0x6a   : > { %461 = vrot.lane.b32.xlu2 %v445_v6, %s1517_s3  ;;  %v569_v6 = vmul.f32 %v562_v42, %v1604_v5 }
  0x6b   : > { %v733_v56 = vrot.slane %v707_v48, 2 }
  0x6c   : > { %v597_v16 = vrot.slane %v569_v6, 1  ;;  %v709_v6 = vmul.f32 %v703_v31, %v1676_v45 }
  0x71   : > { %465 = vrot.lane.b32.xlu1 %v450_v18, %s1517_s3  ;;  %463 = vrot.lane.b32.xlu0 %v448_v20, %s1517_s3  ;;  %v1751_v18 = vstv %s174_s17  ;;  %v598_v20 = vrot.slane %v570_v12, 1 }
  0x72   : > { %529 = vrot.lane.b32.xlu2 %v511_v24, %s1518_s5  ;;  %v571_v24 = vmul.f32 %v562_v42, %v1679_v47  ;;  %v176_v27 = vmul.f32 %v1751_v18, %v1599_v2  ;;  %v604_v42 = vsel %vm368_vm0, %v602_v28, %v603_v29  ;;  %v182_v12 = vmul.f32 %v1751_v18, %v1628_v14 }
  0x73   : > { %v599_v25 = vsel %vm368_vm0, %v597_v16, %v598_v20  ;;  %v178_v22 = vmul.f32 %v1751_v18, %v1596_v1  ;;  %v713_v28 = vmul.f32 %v703_v31, %v1628_v14  ;;  %v180_v50 = vmul.f32 %v1751_v18, %v1604_v5 }
  0x74   : > { %v600_v30 = vrot.slane %v571_v24, 1 }
  0x76   : > { %v601_v43 = vsel %vm368_vm0, %v598_v20, %v600_v30 }
  0x79   : > { %533 = vrot.lane.b32.xlu1 %v516_v33, %s1518_s5  ;;  %531 = vrot.lane.b32.xlu0 %v513_v34, %s1518_s5 }
  0x7a   : > { %535 = vrot.lane.b32.xlu2 %v518_v36, %s1518_s5 }
  0x7c   : > { %v1726_v44 = vpop.permute.xlu2 %218 }
  0x81   : > { %539 = vrot.lane.b32.xlu1 %v523_v46, %s1518_s5  ;;  %537 = vrot.lane.b32.xlu0 %v521_v49, %s1518_s5  ;;  %v606_v46 = vsel %vm368_vm0, %v603_v29, %v605_v35  ;;  %v179_v49 = vmul.f32 %v1751_v18, %v1610_v7  ;;  %v1809_v35 = vstv %s1351_s22 }
  0x82   : > { %541 = vrot.lane.b32.xlu2 %v526_v53, %s1518_s5  ;;  %v708_v53 = vmul.f32 %v703_v31, %v1610_v7  ;;  %v783_v40 = vmul.f32 %v1809_v35, %v1613_v8  ;;  %v787_v3 = vmul.f32 %v1809_v35, %v1676_v45 }
  0x84   : > { %v1738_v60 = vpop.permute.xlu2 %220 }
  0x89   : > { %607 = vrot.lane.b32.xlu1 %v589_v63, %s1519_s7  ;;  %543 = vrot.lane.b32.xlu0 %v528_v0, %s1518_s5  ;;  %v734_v63 = vrot.slane %v708_v53, 2 }
  0x8a   : > { %609 = vrot.lane.b32.xlu2 %v591_v4, %s1519_s7  ;;  %v711_v4 = vmul.f32 %v703_v31, %v1617_v9 }
  0x8b   : > { %v735_v10 = vsel %vm665_vm1, %v733_v56, %v734_v63 }
  0x8c   : > { %v261_v17 = vpop.permute.xlu2 %260  ;;  %v739_v16 = vrot.slane %v711_v4, 2  ;;  %v238_v4 = vadd.f32 %v1726_v44, %v180_v50 }
  0x8e   : > { %v740_v30 = vsel %vm665_vm1, %v738_v15, %v739_v16 }
  0x91   : > { %613 = vrot.lane.b32.xlu1 %v596_v19, %s1519_s7  ;;  %611 = vrot.lane.b32.xlu0 %v594_v21, %s1519_s7  ;;  %v741_v21 = vrot.slane %v712_v11, 2 }
  0x92   : > { %615 = vrot.lane.b32.xlu2 %v599_v25, %s1519_s7  ;;  %v177_v25 = vmul.f32 %v1751_v18, %v1613_v8 }
  0x93   : > { %v1765_v33 = vpop.permute.xlu1 %214  ;;  %v211_v34 = vpop.permute.xlu0 %210 }
  0x94   : > { %v234_v36 = vadd.f32 %v211_v34, %v176_v27  ;;  %v267_v37 = vpop.permute.xlu2 %266  ;;  %v715_v27 = vmul.f32 %v703_v31, %v1692_v59  ;;  %v743_v31 = vrot.slane %v713_v28, 2 }
  0x96   : > { %v1770_v41 = vadd.f32 %v261_v17, %v234_v36  ;;  %v736_v17 = vrot.slane %v709_v6, 2  ;;  %v742_v36 = vsel %vm665_vm1, %v739_v16, %v741_v21  ;;  %v746_v39 = vrot.slane %v715_v27, 2 }
  0x98   : > { %v737_v34 = vsel %vm665_vm1, %v734_v63, %v736_v17  ;;  %v747_v56 = vsel %vm665_vm1, %v744_v38, %v746_v39  ;;  %v814_v17 = vrot.slane %v787_v3, 2  ;;  %v1867_v39 = vstv %s1345_s23 }
  0x99   : > { %619 = vrot.lane.b32.xlu1 %v604_v42, %s1519_s7  ;;  %617 = vrot.lane.b32.xlu0 %v601_v43, %s1519_s7  ;;  %v236_v42 = vadd.f32 %v1765_v33, %v178_v22  ;;  %v745_v33 = vsel %vm665_vm1, %v743_v31, %v744_v38  ;;  %v789_v22 = vmul.f32 %v1809_v35, %v1617_v9 }
  0x9a   : > { %621 = vrot.lane.b32.xlu2 %v606_v46, %s1519_s7 }
  0x9b   : > { %v217_v54 = vpop.permute.xlu1 %216  ;;  %v213_v55 = vpop.permute.xlu0 %212 }
  0x9c   : > { %v237_v57 = vadd.f32 %v217_v54, %v179_v49  ;;  %v273_v58 = vpop.permute.xlu2 %272  ;;  %v235_v43 = vadd.f32 %v213_v55, %v177_v25  ;;  %v181_v54 = vmul.f32 %v1751_v18, %v1617_v9  ;;  %v807_v55 = vrot.slane %v783_v40, 2 }
  0x9e   : > { %v1784_v0 = vadd.f32 %v267_v37, %v237_v57  ;;  %v782_v37 = vmul.f32 %v1809_v35, %v1599_v2  ;;  %v239_v6 = vadd.f32 %v1738_v60, %v181_v54  ;;  %v790_v60 = vmul.f32 %v1809_v35, %v1679_v47 }
  0xa0   : > { %v806_v49 = vrot.slane %v782_v37, 2 }
  0xa1   : > { %750 = vrot.lane.b32.xlu1 %v732_v61, %s1517_s3  ;;  %748 = vrot.lane.b32.xlu0 %v730_v62, %s1517_s3  ;;  %v786_v61 = vmul.f32 %v1809_v35, %v1610_v7  ;;  %v784_v62 = vmul.f32 %v1809_v35, %v1662_v32 }
  0xa2   : > { %752 = vrot.lane.b32.xlu2 %v735_v10, %s1517_s3  ;;  %v808_v63 = vsel %vm665_vm1, %v806_v49, %v807_v55 }
  0xa3   : > { %v1796_v19 = vpop.permute.xlu1 %224  ;;  %v223_v20 = vpop.permute.xlu0 %222  ;;  %v812_v11 = vrot.slane %v786_v61, 2 }
  0xa4   : > { %v240_v23 = vadd.f32 %v223_v20, %v182_v12  ;;  %v313_v24 = vpop.permute.xlu2 %312  ;;  %v809_v12 = vrot.slane %v784_v62, 2 }
  0xa5   : > { %v815_v28 = vsel %vm665_vm1, %v812_v11, %v814_v17 }
  0xa6   : > { %v1805_v29 = vadd.f32 %v273_v58, %v240_v23  ;;  %v785_v58 = vmul.f32 %v1809_v35, %v1596_v1  ;;  %v788_v23 = vmul.f32 %v1809_v35, %v1604_v5  ;;  %v810_v27 = vsel %vm665_vm1, %v807_v55, %v809_v12 }
  0xa7   : > { %v352_v12 = vmul.f32 %v1867_v39, %v1679_v47 }
  0xa8   : > { %v811_v10 = vrot.slane %v785_v58, 2  ;;  %v816_v37 = vrot.slane %v788_v23, 2  ;;  %v793_v58 = vmul.f32 %v1809_v35, %v1692_v59 }
  0xa9   : > { %756 = vrot.lane.b32.xlu1 %v740_v30, %s1517_s3  ;;  %754 = vrot.lane.b32.xlu0 %v737_v34, %s1517_s3  ;;  %v791_v30 = vmul.f32 %v1809_v35, %v1628_v14  ;;  %v817_v34 = vrot.slane %v789_v22, 2  ;;  %v346_v22 = vmul.f32 %v1867_v39, %v1662_v32 }
  0xaa   : > { %758 = vrot.lane.b32.xlu2 %v742_v36, %s1517_s3  ;;  %v813_v26 = vsel %vm665_vm1, %v811_v10, %v812_v11  ;;  %v819_v36 = vrot.slane %v790_v60, 2  ;;  %v1912_v60 = vmul.f32 %v1867_v39, %v1617_v9 }
  0xab   : > { %v265_v46 = vpop.permute.xlu1 %264  ;;  %v263_v48 = vpop.permute.xlu0 %262 }
  0xac   : > { %v1822_v51 = vadd.f32 %v265_v46, %v236_v42  ;;  %v285_v52 = vadd.f32 %v263_v48, %v235_v43  ;;  %v319_v53 = vpop.permute.xlu2 %318  ;;  %v347_v42 = vmul.f32 %v1867_v39, %v1596_v1  ;;  %v1873_v43 = vmul.f32 %v1867_v39, %v1610_v7 }
  0xad   : > { %v1875_v46 = vstv %s1352_s24  ;;  %v821_v48 = vrot.slane %v791_v30, 2  ;;  %s1468_s24 = scalar_lea.hbm %s2391_s2, 128 }
  0xae   : > { %v1828_v57 = vadd.f32 %v313_v24, %v285_v52  ;;  %v183_v24 = vmul.f32 %v1751_v18, %v1625_v13  ;;  %v792_v18 = vmul.f32 %v1809_v35, %v1625_v13  ;;  %v820_v52 = vsel %vm665_vm1, %v817_v34, %v819_v36 }
  0xaf   : > { %v861_v55 = vmul.f32 %v1875_v46, %v1613_v8  ;;  %v375_v61 = vrot.slane %v1873_v43, 1  ;;  %v864_v23 = vmul.f32 %v1875_v46, %v1610_v7  ;;  %v866_v36 = vmul.f32 %v1875_v46, %v1604_v5 }
  0xb0   : > { %v241_v38 = vadd.f32 %v1796_v19, %v183_v24  ;;  %v822_v54 = vrot.slane %v792_v18, 2 }
  0xb1   : > { %762 = vrot.lane.b32.xlu1 %v747_v56, %s1517_s3  ;;  %760 = vrot.lane.b32.xlu0 %v745_v33, %s1517_s3  ;;  %v860_v33 = vmul.f32 %v1875_v46, %v1599_v2 }
  0xb2   : > { %826 = vrot.lane.b32.xlu2 %v808_v63, %s1518_s5  ;;  %v823_v62 = vsel %vm665_vm1, %v821_v48, %v822_v54  ;;  %v862_v63 = vmul.f32 %v1875_v46, %v1662_v32  ;;  %v867_v48 = vmul.f32 %v1875_v46, %v1617_v9 }
  0xb3   : > { %v271_v15 = vpop.permute.xlu1 %270  ;;  %v269_v16 = vpop.permute.xlu0 %268  ;;  %v884_v3 = vrot.slane %v860_v33, 2  ;;  %v894_v33 = vrot.slane %v866_v36, 2 }
  0xb4   : > { %v1844_v20 = vadd.f32 %v271_v15, %v239_v6  ;;  %v288_v21 = vadd.f32 %v269_v16, %v238_v4  ;;  %v325_v44 = vpop.permute.xlu2 %324  ;;  %v885_v4 = vrot.slane %v861_v55, 2  ;;  %v824_v6 = vrot.slane %v793_v58, 2 }
  0xb5   : > { %v887_v15 = vrot.slane %v862_v63, 2 }
  0xb6   : > { %v1854_v25 = vadd.f32 %v319_v53, %v288_v21  ;;  %v818_v53 = vsel %vm665_vm1, %v816_v37, %v817_v34  ;;  %v344_v34 = vmul.f32 %v1867_v39, %v1599_v2 }
  0xb7   : > { %v888_v30 = vsel %vm665_vm1, %v885_v4, %v887_v15  ;;  %v349_v15 = vmul.f32 %v1867_v39, %v1676_v45 }
  0xb9   : > { %830 = vrot.lane.b32.xlu1 %v813_v26, %s1518_s5  ;;  %828 = vrot.lane.b32.xlu0 %v810_v27, %s1518_s5  ;;  %v825_v26 = vsel %vm665_vm1, %v822_v54, %v824_v6  ;;  %v863_v27 = vmul.f32 %v1875_v46, %v1596_v1  ;;  %v369_v54 = vrot.slane %v344_v34, 1  ;;  %v350_v6 = vmul.f32 %v1867_v39, %v1604_v5 }
  0xba   : > { %832 = vrot.lane.b32.xlu2 %v815_v28, %s1518_s5  ;;  %v382_v28 = vrot.slane %v352_v12, 1 }
  0xbb   : > { %v311_v31 = vpop.permute.xlu1 %310  ;;  %v275_v40 = vpop.permute.xlu0 %274 }
  0xbc   : > { %v1878_v49 = vadd.f32 %v311_v31, %v1770_v41  ;;  %v291_v19 = vadd.f32 %v275_v40, %v241_v38  ;;  %v456_v50 = vpop.permute.xlu2 %455  ;;  %v374_v41 = vrot.slane %v347_v42, 1  ;;  %v372_v38 = vrot.slane %v346_v22, 1 }
  0xbd   : > { %v380_v31 = vrot.slane %v1912_v60, 1  ;;  %v890_v40 = vrot.slane %v864_v23, 2  ;;  %v379_v23 = vrot.slane %v350_v6, 1 }
  0xbe   : > { %v1882_v56 = vadd.f32 %v325_v44, %v291_v19  ;;  %v376_v35 = vsel %vm368_vm0, %v374_v41, %v375_v61  ;;  %v345_v44 = vmul.f32 %v1867_v39, %v1613_v8  ;;  %v889_v19 = vrot.slane %v863_v27, 2 }
  0xc0   : > { %v370_v18 = vrot.slane %v345_v44, 1 }
  0xc1   : > { %836 = vrot.lane.b32.xlu1 %v820_v52, %s1518_s5  ;;  %834 = vrot.lane.b32.xlu0 %v818_v53, %s1518_s5  ;;  %v383_v53 = vsel %vm368_vm0, %v380_v31, %v382_v28 }
  0xc2   : > { %838 = vrot.lane.b32.xlu2 %v823_v62, %s1518_s5  ;;  %v373_v41 = vsel %vm368_vm0, %v370_v18, %v372_v38 }
  0xc3   : > { %v317_v10 = vpop.permute.xlu1 %316  ;;  %v315_v11 = vpop.permute.xlu0 %314  ;;  %v398_v22 = vadd.f32 %v373_v41, %v1828_v57  ;;  %v354_v57 = vmul.f32 %v1867_v39, %v1625_v13 }
  0xc4   : > { %v1903_v16 = vadd.f32 %v317_v10, %v1784_v0  ;;  %v336_v17 = vadd.f32 %v315_v11, %v1822_v51  ;;  %v462_v21 = vpop.permute.xlu2 %461  ;;  %v865_v0 = vmul.f32 %v1875_v46, %v1676_v45  ;;  %v886_v51 = vsel %vm665_vm1, %v884_v3, %v885_v4 }
  0xc5   : > { %v869_v3 = vmul.f32 %v1875_v46, %v1628_v14  ;;  %v895_v4 = vrot.slane %v867_v48, 2  ;;  %v891_v11 = vsel %vm665_vm1, %v889_v19, %v890_v40 }
  0xc6   : > { %v399_v24 = vadd.f32 %v376_v35, %v336_v17  ;;  %v892_v42 = vrot.slane %v865_v0, 2  ;;  %v371_v35 = vsel %vm368_vm0, %v369_v54, %v370_v18  ;;  %v871_v17 = vmul.f32 %v1875_v46, %v1692_v59 }
  0xc7   : > { %v896_v12 = vsel %vm665_vm1, %v894_v33, %v895_v4  ;;  %v899_v60 = vrot.slane %v869_v3, 2  ;;  %v397_v0 = vadd.f32 %v371_v35, %v1878_v49  ;;  %v355_v49 = vmul.f32 %v1867_v39, %v1692_v59 }
  0xc8   : > { %v1927_v37 = vadd.f32 %v456_v50, %v399_v24  ;;  %v893_v63 = vsel %vm665_vm1, %v890_v40, %v892_v42  ;;  %v902_v28 = vrot.slane %v871_v17, 2  ;;  %v353_v54 = vmul.f32 %v1867_v39, %v1628_v14 }
  0xc9   : > { %904 = vrot.lane.b32.xlu1 %v886_v51, %s1519_s7  ;;  %840 = vrot.lane.b32.xlu0 %v825_v26, %s1518_s5  ;;  %v1967_v26 = vstv %s1935_s25  ;;  %v387_v41 = vrot.slane %v355_v49, 1 }
  0xca   : > { %906 = vrot.lane.b32.xlu2 %v888_v30, %s1519_s7  ;;  %v1002_v18 = vmul.f32 %v1967_v26, %v1613_v8  ;;  %v1003_v38 = vmul.f32 %v1967_v26, %v1662_v32  ;;  %v1001_v40 = vmul.f32 %v1967_v26, %v1599_v2  ;;  %v1004_v33 = vmul.f32 %v1967_v26, %v1596_v1 }
  0xcb   : > { %v323_v50 = vpop.permute.xlu1 %322  ;;  %v321_v52 = vpop.permute.xlu0 %320  ;;  %v1005_v43 = vmul.f32 %v1967_v26, %v1610_v7  ;;  %v384_v6 = vrot.slane %v353_v54, 1 }
  0xcc   : > { %v1939_v55 = vadd.f32 %v323_v50, %v1805_v29  ;;  %v339_v58 = vadd.f32 %v321_v52, %v1844_v20  ;;  %v530_v62 = vpop.permute.xlu2 %529  ;;  %v870_v29 = vmul.f32 %v1875_v46, %v1625_v13  ;;  %v868_v20 = vmul.f32 %v1875_v46, %v1679_v47 }
  0xcd   : > { %v381_v50 = vsel %vm368_vm0, %v379_v23, %v380_v31  ;;  %v1028_v31 = vrot.slane %v1003_v38, 3  ;;  %v1011_v38 = vmul.f32 %v1967_v26, %v1625_v13 }
  0xce   : > { %v402_v10 = vadd.f32 %v383_v53, %v339_v58  ;;  %v900_v24 = vrot.slane %v870_v29, 2  ;;  %v897_v51 = vrot.slane %v868_v20, 2  ;;  %v385_v58 = vrot.slane %v354_v57, 1 }
  0xcf   : > { %v1041_v54 = vrot.slane %v1011_v38, 3 }
  0xd0   : > { %v1959_v44 = vadd.f32 %v462_v21, %v402_v10  ;;  %v377_v21 = vrot.slane %v349_v15, 1  ;;  %v901_v48 = vsel %vm665_vm1, %v899_v60, %v900_v24  ;;  %v898_v19 = vsel %vm665_vm1, %v895_v4, %v897_v51 }
  0xd1   : > { %910 = vrot.lane.b32.xlu1 %v893_v63, %s1519_s7  ;;  %908 = vrot.lane.b32.xlu0 %v891_v11, %s1519_s7  ;;  %v903_v53 = vsel %vm665_vm1, %v900_v24, %v902_v28  ;;  %v1025_v63 = vrot.slane %v1001_v40, 3  ;;  %v1030_v10 = vrot.slane %v1004_v33, 3  ;;  %v388_v15 = vsel %vm368_vm0, %v385_v58, %v387_v41 }
  0xd2   : > { %912 = vrot.lane.b32.xlu2 %v896_v12, %s1519_s7  ;;  %v378_v52 = vsel %vm368_vm0, %v375_v61, %v377_v21  ;;  %v401_v61 = vadd.f32 %v381_v50, %v1854_v25  ;;  %v1031_v25 = vrot.slane %v1005_v43, 3  ;;  %v1006_v60 = vmul.f32 %v1967_v26, %v1676_v45 }
  0xd3   : > { %v454_v27 = vpop.permute.xlu1 %453  ;;  %v452_v46 = vpop.permute.xlu0 %451  ;;  %v400_v3 = vadd.f32 %v378_v52, %v1903_v16  ;;  %v1007_v16 = vmul.f32 %v1967_v26, %v1604_v5  ;;  %v386_v23 = vsel %vm368_vm0, %v384_v6, %v385_v58  ;;  %v1009_v24 = vmul.f32 %v1967_v26, %v1679_v47 }
  0xd4   : > { %v1969_v30 = vadd.f32 %v454_v27, %v398_v22  ;;  %v475_v34 = vadd.f32 %v452_v46, %v397_v0  ;;  %v536_v36 = vpop.permute.xlu2 %535  ;;  %v1008_v22 = vmul.f32 %v1967_v26, %v1617_v9  ;;  %v1032_v0 = vsel %vm962_vm2, %v1030_v10, %v1031_v25 }
  0xd5   : > { %v404_v5 = vadd.f32 %v388_v15, %v1882_v56  ;;  %v403_v51 = vadd.f32 %v386_v23, %v1939_v55  ;;  %v1035_v27 = vrot.slane %v1007_v16, 3  ;;  %v1033_v21 = vrot.slane %v1006_v60, 3  ;;  %v2074_v23 = vld [vmem:[%s1593_s30 + $0x30] sm:$0xff] }
  0xd6   : > { %v1981_v42 = vadd.f32 %v530_v62, %v475_v34  ;;  %v1026_v62 = vrot.slane %v1002_v18, 3  ;;  %v1036_v46 = vrot.slane %v1008_v22, 3  ;;  %v1012_v56 = vmul.f32 %v1967_v26, %v1692_v59 }
  0xd7   : > { %v1010_v55 = vmul.f32 %v1967_v26, %v1628_v14  ;;  %v2035_v50 = vstv %s1355_s26 }
  0xd8   : > { %v1029_v35 = vsel %vm962_vm2, %v1026_v62, %v1028_v31  ;;  %v1027_v12 = vsel %vm962_vm2, %v1025_v63, %v1026_v62  ;;  %v1043_v33 = vrot.slane %v1012_v56, 3  ;;  %v1080_v58 = vmul.f32 %v2035_v50, %v1613_v8 }
  0xd9   : > { %916 = vrot.lane.b32.xlu1 %v901_v48, %s1519_s7  ;;  %914 = vrot.lane.b32.xlu0 %v898_v19, %s1519_s7  ;;  %v1037_v48 = vsel %vm962_vm2, %v1035_v27, %v1036_v46  ;;  %v1034_v19 = vsel %vm962_vm2, %v1031_v25, %v1033_v21  ;;  %v1040_v26 = vrot.slane %v1010_v55, 3  ;;  %v1082_v8 = vmul.f32 %v2035_v50, %v1596_v1 }
  0xda   : > { %918 = vrot.lane.b32.xlu2 %v903_v53, %s1519_s7  ;;  %v1079_v53 = vmul.f32 %v2035_v50, %v1599_v2  ;;  %v1083_v6 = vmul.f32 %v2035_v50, %v1610_v7  ;;  %v1086_v22 = vmul.f32 %v2035_v50, %v1617_v9  ;;  %v1087_v60 = vmul.f32 %v2035_v50, %v1679_v47 }
  0xdb   : > { %v460_v39 = vpop.permute.xlu1 %459  ;;  %v458_v4 = vpop.permute.xlu0 %457  ;;  %v1088_v9 = vmul.f32 %v2035_v50, %v1628_v14  ;;  %v1089_v21 = vmul.f32 %v2035_v50, %v1625_v13  ;;  %v2104_v13 = vstv %s1356_s28 }
  0xdc   : > { %v2001_v11 = vadd.f32 %v460_v39, %v401_v61  ;;  %v478_v29 = vadd.f32 %v458_v4, %v400_v3  ;;  %v542_v20 = vpop.permute.xlu2 %541  ;;  %v1103_v31 = vrot.slane %v1079_v53, 3  ;;  %v1044_v61 = vsel %vm962_vm2, %v1041_v54, %v1043_v33 }
  0xdd   : > { %v1042_v3 = vsel %vm962_vm2, %v1040_v26, %v1041_v54  ;;  %v1104_v39 = vrot.slane %v1080_v58, 3  ;;  %v1116_v27 = vrot.slane %v1087_v60, 3  ;;  %v1118_v56 = vrot.slane %v1088_v9, 3  ;;  %v2115_v26 = vld [vmem:[%s1593_s30] sm:$0xff] }
  0xde   : > { %v2006_v17 = vadd.f32 %v536_v36, %v478_v29  ;;  %v1038_v36 = vrot.slane %v1009_v24, 3  ;;  %v1108_v29 = vrot.slane %v1082_v8, 3  ;;  %v1119_v54 = vrot.slane %v1089_v21, 3 }
  0xdf   : > { %v1105_v10 = vsel %vm962_vm2, %v1103_v31, %v1104_v39  ;;  %v1157_v58 = vmul.f32 %v2115_v26, %v2104_v13 }
  0xe0   : > { %v1039_v52 = vsel %vm962_vm2, %v1036_v46, %v1038_v36 }
  0xe1   : > { %1047 = vrot.lane.b32.xlu1 %v1029_v35, %s1517_s3  ;;  %1045 = vrot.lane.b32.xlu0 %v1027_v12, %s1517_s3 }
  0xe2   : > { %1049 = vrot.lane.b32.xlu2 %v1032_v0, %s1517_s3  ;;  %v1085_v0 = vmul.f32 %v2074_v23, %v2035_v50 }
  0xe3   : > { %v466_v28 = vpop.permute.xlu1 %465  ;;  %v464_v34 = vpop.permute.xlu0 %463 }
  0xe4   : > { %v2023_v57 = vadd.f32 %v466_v28, %v404_v5  ;;  %v481_v49 = vadd.f32 %v464_v34, %v403_v51  ;;  %v610_v18 = vpop.permute.xlu2 %609  ;;  %v1114_v51 = vrot.slane %v1086_v22, 3  ;;  %v1113_v46 = vrot.slane %v1085_v0, 3 }
  0xe5   : > { %v2090_v28 = vstv %s1349_s27  ;;  %v1163_v0 = vmul.f32 %v2074_v23, %v2104_v13 }
  0xe6   : > { %v2031_v40 = vadd.f32 %v542_v20, %v481_v49  ;;  %v1109_v20 = vrot.slane %v1083_v6, 3  ;;  %v2093_v49 = vld [vmem:[%s1593_s30 + $0x18] sm:$0xff]  ;;  %v1115_v53 = vsel %vm962_vm2, %v1113_v46, %v1114_v51  ;;  %v649_v6 = vmul.f32 %v2090_v28, %v1679_v47 }
  0xe7   : > { %v644_v14 = vmul.f32 %v2093_v49, %v2090_v28 }
  0xe8   : > { %v679_v22 = vrot.slane %v649_v6, 2  ;;  %v2207_v6 = vld [vmem:[%s1593_s30 + $0x58] sm:$0x7] }
  0xe9   : > { %1053 = vrot.lane.b32.xlu1 %v1037_v48, %s1517_s3  ;;  %1051 = vrot.lane.b32.xlu0 %v1034_v19, %s1517_s3 }
  0xea   : > { %1055 = vrot.lane.b32.xlu2 %v1039_v52, %s1517_s3  ;;  %v1117_v52 = vsel %vm962_vm2, %v1114_v51, %v1116_v27 }
  0xeb   : > { %v534_v41 = vpop.permute.xlu1 %533  ;;  %v532_v62 = vpop.permute.xlu0 %531 }
  0xec   : > { %v2046_v63 = vadd.f32 %v534_v41, %v1927_v37  ;;  %v554_v2 = vadd.f32 %v532_v62, %v1969_v30  ;;  %v616_v43 = vpop.permute.xlu2 %615  ;;  %v1081_v37 = vmul.f32 %v2035_v50, %v1662_v32  ;;  %v1084_v30 = vmul.f32 %v2035_v50, %v1676_v45  ;;  %v2120_v41 = vld [vmem:[%s1593_s30 + $0x8] sm:$0xff] }
  0xed   : > { %v671_v62 = vrot.slane %v644_v14, 2 }
  0xee   : > { %v2051_v4 = vadd.f32 %v610_v18, %v554_v2  ;;  %v1106_v35 = vrot.slane %v1081_v37, 3  ;;  %v1111_v12 = vrot.slane %v1084_v30, 3  ;;  %v2098_v18 = vld [vmem:[%s1593_s30 + $0x20] sm:$0xff]  ;;  %v1120_v2 = vsel %vm962_vm2, %v1118_v56, %v1119_v54 }
  0xef   : > { %v2102_v38 = vmul.f32 %v2098_v18, %v2090_v28  ;;  %v642_v37 = vmul.f32 %v2120_v41, %v2090_v28  ;;  %v1161_v47 = vmul.f32 %v2098_v18, %v2104_v13  ;;  %v1191_v56 = vrot.slane %v1163_v0, 3 }
  0xf0   : > { %v1112_v5 = vsel %vm962_vm2, %v1109_v20, %v1111_v12  ;;  %v1162_v12 = vmul.f32 %v2104_v13, %v1676_v45 }
  0xf1   : > { %1059 = vrot.lane.b32.xlu1 %v1044_v61, %s1517_s3  ;;  %1057 = vrot.lane.b32.xlu0 %v1042_v3, %s1517_s3  ;;  %v672_v31 = vrot.slane %v2102_v38, 2  ;;  %v1181_v61 = vrot.slane %v1157_v58, 3  ;;  %v1187_v9 = vrot.slane %v1161_v47, 3 }
  0xf2   : > { %1123 = vrot.lane.b32.xlu2 %v1105_v10, %s1518_s5  ;;  %v1189_v51 = vrot.slane %v1162_v12, 3 }
  0xf3   : > { %v540_v1 = vpop.permute.xlu1 %539  ;;  %v538_v7 = vpop.permute.xlu0 %537 }
  0xf4   : > { %v2066_v15 = vadd.f32 %v540_v1, %v1959_v44  ;;  %v557_v25 = vadd.f32 %v538_v7, %v2001_v11  ;;  %v622_v16 = vpop.permute.xlu2 %621  ;;  %v1110_v44 = vsel %vm962_vm2, %v1108_v29, %v1109_v20  ;;  %v1107_v11 = vsel %vm962_vm2, %v1104_v39, %v1106_v35  ;;  %v2145_v20 = vld [vmem:[%s1593_s30 + $0x38] sm:$0xff] }
  0xf5   : > { %v2149_v35 = vmul.f32 %v2145_v20, %v2090_v28  ;;  %v643_v7 = vmul.f32 %v2090_v28, %v1662_v32  ;;  %v1164_v46 = vmul.f32 %v2145_v20, %v2104_v13 }
  0xf6   : > { %v2078_v24 = vadd.f32 %v616_v43, %v557_v25  ;;  %v1159_v43 = vmul.f32 %v2104_v13, %v1662_v32  ;;  %v641_v32 = vmul.f32 %v2115_v26, %v2090_v28 }
  0xf7   : > { %v677_v45 = vrot.slane %v2149_v35, 2 }
  0xf8   : > { %v1184_v10 = vrot.slane %v1159_v43, 3  ;;  %v666_v14 = vrot.slane %v641_v32, 2 }
  0xf9   : > { %1127 = vrot.lane.b32.xlu1 %v1110_v44, %s1518_s5  ;;  %1125 = vrot.lane.b32.xlu0 %v1107_v11, %s1518_s5  ;;  %v667_v11 = vrot.slane %v642_v37, 2  ;;  %v1168_v37 = vmul.f32 %v2207_v6, %v2104_v13 }
  0xfa   : > { %1129 = vrot.lane.b32.xlu2 %v1112_v5, %s1518_s5  ;;  %v669_v5 = vrot.slane %v643_v7, 2 }
  0xfb   : > { %v608_v34 = vpop.permute.xlu1 %607  ;;  %v544_v36 = vpop.permute.xlu0 %543 }
  0xfc   : > { %v2107_v55 = vadd.f32 %v608_v34, %v1981_v42  ;;  %v560_v48 = vadd.f32 %v544_v36, %v2023_v57  ;;  %v753_v19 = vpop.permute.xlu2 %752  ;;  %v1158_v42 = vmul.f32 %v2120_v41, %v2104_v13  ;;  %v1090_v57 = vmul.f32 %v2035_v50, %v1692_v59 }
  0xfd   : > { %v673_v50 = vsel %vm665_vm1, %v671_v62, %v672_v31  ;;  %v680_v36 = vsel %vm665_vm1, %v677_v45, %v679_v22  ;;  %v1199_v22 = vrot.slane %v1168_v37, 3 }
  0xfe   : > { %v2112_v33 = vadd.f32 %v622_v16, %v560_v48  ;;  %v1182_v3 = vrot.slane %v1158_v42, 3  ;;  %v1121_v39 = vrot.slane %v1090_v57, 3  ;;  %v1192_v42 = vrot.slane %v1164_v46, 3 }
  0xff   : > { %v647_v57 = vmul.f32 %v2074_v23, %v2090_v28 }
 0x100   : > { %v1183_v25 = vsel %vm962_vm2, %v1181_v61, %v1182_v3  ;;  %v1122_v16 = vsel %vm962_vm2, %v1119_v54, %v1121_v39  ;;  %v1185_v60 = vsel %vm962_vm2, %v1182_v3, %v1184_v10  ;;  %v1190_v54 = vsel %vm962_vm2, %v1187_v9, %v1189_v51  ;;  %v2195_v61 = vld [vmem:[%s1593_s30 + $0x40] sm:$0x7] }
 0x101   : > { %1133 = vrot.lane.b32.xlu1 %v1117_v52, %s1518_s5  ;;  %1131 = vrot.lane.b32.xlu0 %v1115_v53, %s1518_s5  ;;  %v670_v52 = vsel %vm665_vm1, %v667_v11, %v669_v5  ;;  %v1165_v3 = vmul.f32 %v2195_v61, %v2104_v13  ;;  %v668_v39 = vsel %vm665_vm1, %v666_v14, %v667_v11  ;;  %v676_v35 = vrot.slane %v647_v57, 2 }
 0x102   : > { %1135 = vrot.lane.b32.xlu2 %v1120_v2, %s1518_s5  ;;  %v2185_v2 = vld [vmem:[%s1593_s30 + $0x48] sm:$0xff]  ;;  %v694_v7 = vadd.f32 %v668_v39, %v2107_v55 }
 0x103   : > { %v614_v8 = vpop.permute.xlu1 %613  ;;  %v612_v59 = vpop.permute.xlu0 %611  ;;  %v678_v32 = vsel %vm665_vm1, %v676_v35, %v677_v45  ;;  %v650_v45 = vmul.f32 %v2185_v2, %v2090_v28 }
 0x104   : > { %v2141_v30 = vadd.f32 %v614_v8, %v2006_v17  ;;  %v633_v29 = vadd.f32 %v612_v59, %v2046_v63  ;;  %v759_v1 = vpop.permute.xlu2 %758  ;;  %v1160_v17 = vmul.f32 %v2093_v49, %v2104_v13  ;;  %v1193_v8 = vsel %vm962_vm2, %v1191_v56, %v1192_v42  ;;  %v2202_v59 = vld [vmem:[%s1593_s30 + $0x28] sm:$0x7] }
 0x106   : > { %v696_v63 = vadd.f32 %v673_v50, %v633_v29  ;;  %v1186_v27 = vrot.slane %v1160_v17, 3  ;;  %v646_v50 = vmul.f32 %v2202_v59, %v2090_v28  ;;  %v695_v29 = vadd.f32 %v670_v52, %v2051_v4 }
 0x107   : > { %v1194_v17 = vrot.slane %v1165_v3, 3 }
 0x108   : > { %v2166_v44 = vadd.f32 %v753_v19, %v696_v63  ;;  %v1188_v58 = vsel %vm962_vm2, %v1186_v27, %v1187_v9  ;;  %v652_v9 = vmul.f32 %v2207_v6, %v2090_v28  ;;  %v698_v27 = vadd.f32 %v678_v32, %v2078_v24 }
 0x109   : > { %1201 = vrot.lane.b32.xlu1 %v1183_v25, %s1519_s7  ;;  %1137 = vrot.lane.b32.xlu0 %v1122_v16, %s1518_s5  ;;  %v674_v16 = vrot.slane %v646_v50, 2  ;;  %v1195_v55 = vsel %vm962_vm2, %v1192_v42, %v1194_v17  ;;  %s1364_s5 = sshll.u32 %s1558_s13, 6 }
 0x10a   : > { %1203 = vrot.lane.b32.xlu2 %v1185_v60, %s1519_s7  ;;  %s1255_s8 = scalar_lea.hbm %s2391_s2, %s1364_s5 }
 0x10b   : > { %v620_v21 = vpop.permute.xlu1 %619  ;;  %v618_v34 = vpop.permute.xlu0 %617  ;;  %v675_v5 = vsel %vm665_vm1, %v672_v31, %v674_v16  ;;  %s1258_s14 = sshll.u32 %s1255_s8, 4  ;;  %s1259_s14 = int_to_ptr.hbm [resolvable:$true] %s1258_s14 }
 0x10c   : > { %v2176_v48 = vadd.f32 %v620_v21, %v2031_v40  ;;  %v636_v19 = vadd.f32 %v618_v34, %v2066_v15  ;;  %v827_v53 = vpop.permute.xlu2 %826  ;;  %v1166_v40 = vmul.f32 %v2185_v2, %v2104_v13  ;;  %v2190_v15 = vld [vmem:[%s1593_s30 + $0x50] sm:$0xff]  ;;  %v697_v46 = vadd.f32 %v675_v5, %v2141_v30  ;;  %s1462_s17 = sshra.s32 %s1259_s14, 4  ;;  %s1463_s17 = int_to_ptr.hbm [resolvable:$true] %s1462_s17 }
 0x10d   : > { %v1167_v43 = vmul.f32 %v2190_v15, %v2104_v13  ;;  %v651_v11 = vmul.f32 %v2190_v15, %v2090_v28  ;;  %v684_v34 = vrot.slane %v652_v9, 2  ;;  %s1464_s21 = scalar_lea.hbm %s1463_s17, 64  ;;  %p1469_p3 = scmp.lt.s32.totalorder %s1463_s17, %s2391_s2 }
 0x10e   : > { %v699_v62 = vadd.f32 %v680_v36, %v636_v19  ;;  %v1196_v47 = vrot.slane %v1166_v40, 3  ;;  %v681_v36 = vrot.slane %v650_v45, 2  ;;  %p1465_p0 = scmp.ne.s32.totalorder %s1463_s17, %s1464_s21  ;;  %p1470_p4 = scmp.lt.s32.totalorder %s1468_s24, %s1464_s21 }
 0x10f   : > { %v1197_v12 = vrot.slane %v1167_v43, 3  ;;  %v682_v21 = vrot.slane %v651_v11, 2  ;;  %v1432_v11 = vld [vmem:[%s1593_s30 + $0x10] sm:$0x7]  ;;  %s151_s30 = sand.u32 1, %s1506_s10  }
 0x110   : > { %v777_v10 = vadd.f32 %v759_v1, %v699_v62  ;;  %s1339_s3 = sshll.u32 %s151_s30, 6  ;;  %s1243_s16 = scalar_lea.sflag [#allocation3], %s151_s30 }
 0x111   : > { %1207 = vrot.lane.b32.xlu1 %v1190_v54, %s1519_s7  ;;  %1205 = vrot.lane.b32.xlu0 %v1188_v58, %s1519_s7  ;;  %v1198_v4 = vsel %vm962_vm2, %v1196_v47, %v1197_v12  ;;  %v1200_v51 = vsel %vm962_vm2, %v1197_v12, %v1199_v22  ;;  %v685_v28 = vsel %vm665_vm1, %v682_v21, %v684_v34  ;;  %s2304_s4 = scalar_lea.vmem [#allocation5], %s1339_s3  ;;  %p1466_p1 = pnand %p1465_p0, %p1575_p5 }
 0x112   : > { %1209 = vrot.lane.b32.xlu2 %v1193_v8, %s1519_s7  ;;  %v701_v24 = vadd.f32 %v685_v28, %v2112_v33  ;;  %s1256_s13 = sshll.u32 %s2304_s4, 4  ;;  %p1471_p7 = por %p1470_p4, %p1469_p3  ;;  %s1257_s13 = int_to_ptr.vmem [resolvable:$true] %s1256_s13 }
 0x113   : > { %v751_v63 = vpop.permute.xlu1 %750  ;;  %v749_v25 = vpop.permute.xlu0 %748  ;;  %p1467_p2 = pneg %p1466_p1 }
 0x114   : > { %v2216_v13 = vadd.f32 %v751_v63, %v695_v29  ;;  %v772_v1 = vadd.f32 %v749_v25, %v694_v7  ;;  %v833_v60 = vpop.permute.xlu2 %832 }
 0x115   : > { %p1472_p8 = pnand %p1471_p7, %p1467_p2 }
 0x116   : > { %v2219_v0 = vadd.f32 %v827_v53, %v772_v1  ;;  %v683_v53 = vsel %vm665_vm1, %v681_v36, %v682_v21  ;;  %v2269_v1 = vstv %s1353_s29 }
 0x117   : > { %v700_v30 = vadd.f32 %v683_v53, %v2176_v48  ;;  %v940_v5 = vmul.f32 %v1432_v11, %v2269_v1 }
 0x119   : > { %1213 = vrot.lane.b32.xlu1 %v1198_v4, %s1519_s7  ;;  %1211 = vrot.lane.b32.xlu0 %v1195_v55, %s1519_s7  ;;  %v939_v55 = vmul.f32 %v2120_v41, %v2269_v1  ;;  %v966_v45 = vrot.slane %v940_v5, 3  ;;  %v944_v41 = vmul.f32 %v2074_v23, %v2269_v1  ;;  %v948_v23 = vmul.f32 %v2190_v15, %v2269_v1 }
 0x11a   : > { %1215 = vrot.lane.b32.xlu2 %v1200_v51, %s1519_s7 }
 0x11b   : > { %v757_v38 = vpop.permute.xlu1 %756  ;;  %v755_v31 = vpop.permute.xlu0 %754  ;;  %v964_v51 = vrot.slane %v939_v55, 3  ;;  %v973_v28 = vrot.slane %v944_v41, 3  ;;  %v946_v41 = vmul.f32 %v2195_v61, %v2269_v1 }
 0x11c   : > { %v776_v14 = vadd.f32 %v757_v38, %v698_v27  ;;  %v775_v56 = vadd.f32 %v755_v31, %v697_v46  ;;  %v839_v19 = vpop.permute.xlu2 %838  ;;  %v2284_v31 = vmul.f32 %v2145_v20, %v2269_v1 }
 0x11d   : > { %v967_v21 = vsel %vm962_vm2, %v964_v51, %v966_v45 }
 0x11e   : > { %v2238_v52 = vadd.f32 %v833_v60, %v775_v56 }
 0x123   : > { %v763_v54 = vpop.permute.xlu1 %762  ;;  %v761_v58 = vpop.permute.xlu0 %760 }
 0x124   : > { %v779_v42 = vadd.f32 %v763_v54, %v701_v24  ;;  %v778_v57 = vadd.f32 %v761_v58, %v700_v30  ;;  %v907_v62 = vpop.permute.xlu2 %906 }
 0x126   : > { %v2244_v40 = vadd.f32 %v839_v19, %v778_v57  ;;  %v974_v19 = vrot.slane %v2284_v31, 3 }
 0x12b   : > { %v831_v43 = vpop.permute.xlu1 %830  ;;  %v829_v3 = vpop.permute.xlu0 %828 }
 0x12c   : > { %v2247_v39 = vadd.f32 %v831_v43, %v2166_v44  ;;  %v913_v8 = vpop.permute.xlu2 %912  ;;  %v851_v9 = vadd.f32 %v829_v3, %v2216_v13  ;;  %v938_v13 = vmul.f32 %v2115_v26, %v2269_v1  ;;  %v975_v26 = vsel %vm962_vm2, %v973_v28, %v974_v19 }
 0x12e   : > { %v929_v38 = vadd.f32 %v907_v62, %v851_v9  ;;  %v963_v20 = vrot.slane %v938_v13, 3 }
 0x130   : > { %v992_v56 = vadd.f32 %v967_v21, %v929_v38  ;;  %v965_v62 = vsel %vm962_vm2, %v963_v20, %v964_v51  ;;  %v976_v20 = vrot.slane %v946_v41, 3 }
 0x133   : > { %v837_v50 = vpop.permute.xlu1 %836  ;;  %v835_v37 = vpop.permute.xlu0 %834 }
 0x134   : > { %v2249_v29 = vadd.f32 %v837_v50, %v777_v10  ;;  %v2251_v33 = vpop.permute.xlu2 %918  ;;  %v854_v36 = vadd.f32 %v835_v37, %v776_v14  ;;  %v949_v14 = vmul.f32 %v2207_v6, %v2269_v1  ;;  %v941_v37 = vmul.f32 %v2093_v49, %v2269_v1 }
 0x135   : > { %v942_v6 = vmul.f32 %v2098_v18, %v2269_v1 }
 0x136   : > { %v932_v54 = vadd.f32 %v913_v8, %v854_v36  ;;  %v979_v8 = vrot.slane %v948_v23, 3  ;;  %v981_v55 = vrot.slane %v949_v14, 3  ;;  %v968_v9 = vrot.slane %v941_v37, 3 }
 0x137   : > { %v969_v51 = vrot.slane %v942_v6, 3 }
 0x138   : > { %v995_v50 = vadd.f32 %v975_v26, %v932_v54  ;;  %v982_v49 = vsel %vm962_vm2, %v979_v8, %v981_v55 }
 0x13b   : > { %v905_v48 = vpop.permute.xlu1 %904  ;;  %v841_v35 = vpop.permute.xlu0 %840 }
 0x13c   : > { %v2253_v7 = vpop.permute.xlu2 %1049  ;;  %v928_v43 = vadd.f32 %v905_v48, %v2219_v0  ;;  %v857_v3 = vadd.f32 %v841_v35, %v779_v42 }
 0x13e   : > { %v935_v35 = vadd.f32 %v2251_v33, %v857_v3  ;;  %v991_v11 = vadd.f32 %v965_v62, %v928_v43  ;;  %v970_v33 = vsel %vm962_vm2, %v968_v9, %v969_v51 }
 0x143   : > { %v2255_v47 = vpop.permute.xlu1 %910  ;;  %v2257_v12 = vpop.permute.xlu0 %908 }
 0x144   : > { %v2259_v17 = vpop.permute.xlu2 %1055  ;;  %v931_v18 = vadd.f32 %v2255_v47, %v2238_v52 }
 0x14b   : > { %v2261_v44 = vpop.permute.xlu1 %916  ;;  %v2263_v63 = vpop.permute.xlu0 %914 }
 0x14c   : > { %v2265_v25 = vpop.permute.xlu2 %1123 }
 0x153   : > { %v1048_v10 = vpop.permute.xlu1 %1047  ;;  %v1046_v16 = vpop.permute.xlu0 %1045 }
 0x154   : > { %v2267_v22 = vpop.permute.xlu2 %1129  ;;  %v1070_v53 = vadd.f32 %v1048_v10, %v992_v56  ;;  %v943_v10 = vmul.f32 %v2202_v59, %v2269_v1  ;;  %v1069_v38 = vadd.f32 %v1046_v16, %v991_v11  ;;  %v930_v59 = vadd.f32 %v2257_v12, %v2247_v39 }
 0x155   : > { %v947_v16 = vmul.f32 %v2185_v2, %v2269_v1  ;;  %v933_v1 = vadd.f32 %v2263_v63, %v2249_v29 }
 0x156   : > { %v971_v45 = vrot.slane %v943_v10, 3  ;;  %v1147_v13 = vadd.f32 %v2265_v25, %v1069_v38  ;;  %v993_v36 = vadd.f32 %v970_v33, %v930_v59  ;;  %v934_v25 = vadd.f32 %v2261_v44, %v2244_v40 }
 0x158   : > { %v1071_v2 = vadd.f32 %v2253_v7, %v993_v36 }
 0x15b   : > { %v1054_v60 = vpop.permute.xlu1 %1053  ;;  %v2271_v32 = vpop.permute.xlu0 %1051 }
 0x15c   : > { %v2273_v4 = vpop.permute.xlu2 %1135  ;;  %v1073_v0 = vadd.f32 %v1054_v60, %v995_v50  ;;  %v998_v60 = vadd.f32 %v982_v49, %v935_v35 }
 0x163   : > { %v1060_v27 = vpop.permute.xlu1 %1059  ;;  %v2280_v46 = vpop.permute.xlu0 %1057 }
 0x164   : > { %v1204_v34 = vpop.permute.xlu2 %1203  ;;  %v1076_v52 = vadd.f32 %v1060_v27, %v998_v60  ;;  %v977_v27 = vsel %vm962_vm2, %v974_v19, %v976_v20 }
 0x165   : > { %v996_v40 = vadd.f32 %v977_v27, %v933_v1 }
 0x16b   : > { %v1128_v24 = vpop.permute.xlu1 %1127  ;;  %v1126_v30 = vpop.permute.xlu0 %1125 }
 0x16c   : > { %v1148_v58 = vadd.f32 %v1126_v30, %v1070_v53  ;;  %v1210_v15 = vpop.permute.xlu2 %1209  ;;  %v978_v30 = vrot.slane %v947_v16, 3  ;;  %v1149_v7 = vadd.f32 %v1128_v24, %v1071_v2 }
 0x16e   : > { %v1226_v57 = vadd.f32 %v1204_v34, %v1148_v58  ;;  %v972_v34 = vsel %vm962_vm2, %v969_v51, %v971_v45 }
 0x16f   : > { %v994_v56 = vadd.f32 %v972_v34, %v931_v18 }
 0x170   : > { %1235 = vst.msk [vmem:[%s2304_s4 + $0x8] sm:$0xff] %vm1233_vm3, %v1226_v57 }
 0x171   : > { %v1072_v61 = vadd.f32 %v2271_v32, %v994_v56  ;;  %v980_v32 = vsel %vm962_vm2, %v978_v30, %v979_v8 }
 0x172   : > { %v997_v44 = vadd.f32 %v980_v32, %v934_v25 }
 0x173   : > { %v1134_v42 = vpop.permute.xlu1 %1133  ;;  %v1132_v48 = vpop.permute.xlu0 %1131  ;;  %v1150_v23 = vadd.f32 %v2267_v22, %v1072_v61  ;;  %v1074_v22 = vadd.f32 %v2259_v17, %v996_v40 }
 0x174   : > { %v1151_v5 = vadd.f32 %v1132_v48, %v1073_v0  ;;  %v1216_v47 = vpop.permute.xlu2 %1215  ;;  %v1075_v63 = vadd.f32 %v2280_v46, %v997_v44 }
 0x175   : > { %v1152_v19 = vadd.f32 %v1134_v42, %v1074_v22 }
 0x176   : > { %v1229_v21 = vadd.f32 %v1210_v15, %v1151_v5  ;;  %v1153_v31 = vadd.f32 %v2273_v4, %v1075_v63 }
 0x178   : > { %1238 = vst.msk [vmem:[%s2304_s4 + $0x20] sm:$0xff] %vm1233_vm3, %v1229_v21 }
 0x17b   : > { %v1202_v39 = vpop.permute.xlu1 %1201  ;;  %v1138_v12 = vpop.permute.xlu0 %1137 }
 0x17c   : > { %v1225_v28 = vadd.f32 %v1202_v39, %v1147_v13  ;;  %v1154_v53 = vadd.f32 %v1138_v12, %v1076_v52 }
 0x17e   : > { %1234 = vst.msk [vmem:[%s2304_s4] sm:$0xff] %vm1233_vm3, %v1225_v28  ;;  %v1232_v54 = vadd.f32 %v1216_v47, %v1154_v53 }
 0x180   : > { %1241 = vst.msk [vmem:[%s2304_s4 + $0x38] sm:$0xff] %vm1233_vm3, %v1232_v54 }
 0x183   : > { %v1208_v58 = vpop.permute.xlu1 %1207  ;;  %v1206_v26 = vpop.permute.xlu0 %1205 }
 0x184   : > { %v1228_v14 = vadd.f32 %v1208_v58, %v1150_v23  ;;  %v1227_v29 = vadd.f32 %v1206_v26, %v1149_v7 }
 0x186   : > { %1237 = vst.msk [vmem:[%s2304_s4 + $0x18] sm:$0xff] %vm1233_vm3, %v1228_v14 }
 0x187   : > { %1236 = vst.msk [vmem:[%s2304_s4 + $0x10] sm:$0xff] %vm1233_vm3, %v1227_v29 }
 0x18b   : > { %v1214_v24 = vpop.permute.xlu1 %1213  ;;  %v1212_v46 = vpop.permute.xlu0 %1211 }
 0x18c   : > { %v1231_v57 = vadd.f32 %v1214_v24, %v1153_v31  ;;  %v1230_v62 = vadd.f32 %v1212_v46, %v1152_v19 }
 0x18e   : > { %1240 = vst.msk [vmem:[%s2304_s4 + $0x30] sm:$0xff] %vm1233_vm3, %v1231_v57 }
 0x18f   : > { %1239 = vst.msk [vmem:[%s2304_s4 + $0x28] sm:$0xff] %vm1233_vm3, %v1230_v62 }
 0x190   : > { %1475 = shalt.err (!%p1472_p8)
}
 0x191   : > { %s1520_s27 = smov 128   ;;  %s1521_s28 = smov 8  }
 0x192   : > { %1370 = dma.vmem_to_hbm [thread:$0]  (%p1575_p5), %s1257_s13, 1024, %s1259_s14, %s1243_s16, %s1520_s27, %s1520_s27, %s1521_s28  }
 0x193 PF: > { %p1382_p9 = scmp.ge.s32.totalorder %s1514_s12, 2  ;;  %s1273_s29 = sand.u32 1, %s1502_s9  }
 0x194   : > { %s1274_s30 = scalar_lea.sflag [#allocation3], %s1273_s29 }
 0x195   : > { %p1377_p10 = pnand %p1382_p9, %p1579_p6 }
 0x197   : > { %p1378_p11 = pneg %p1377_p10 }
 0x199   : > { %1497 = dma.done.wait (%p1378_p11), %s1274_s30, 1024  }
 0x19a   : > { %1499 = vsyncadd (%p1378_p11), %s1274_s30, 4294966272  ;;  %p13_p12 = scmp.ge.s32.totalorder %s1562_s15, 4   ;;  %s2394_s9 = smov %s1506_s10 }
 0x19b   : > { %s2395_s10 = smov %s1510_s11  ;;  %s2396_s11 = smov %s1573_s18 }
 0x19c   : > { %s2397_s12 = smov %s1562_s15  ;;  %15 = sbr.rel (!%p13_p12) target bundleno = 4 (0x4), region = 68 }
 0x1a1   :  { %1280 = vsyncpa [#allocation3], 1 }
 0x1a2   :  { %1282 = vsyncpa [#allocation3 + $0x1], 1 }
 0x1a3   :  { %1283 = vsyncpa [#allocation4], 1 }
 0x1a4   :  { %1285 = vsyncpa [#allocation4 + $0x1], 1 }

</bundles_post_ra>
